<compile_context>
chip_gen: v7x
topology: tpu7x:2x2x1
jax: 0.10.0
libtpu: 0.0.40
codegen_flags: <defaults>
</compile_context>

<pallas_src>
import functools
import math

import jax
import jax.numpy as jnp
from jax.experimental import pallas as pl
from jax.experimental.pallas import tpu as pltpu

NEG_INF = -1e30  # finite stand-in for float('-inf'); added in f32 after the matmul


# ----------------------------------------------------------------------------
# helpers
# ----------------------------------------------------------------------------
def _row_tile(M, target=256):
    """Pick a row tile: whole M when small, else the largest 8-multiple divisor <= target."""
    if M <= target:
        return M
    for t in range(target, 7, -8):
        if M % t == 0:
            return t
    return M


_PARALLEL_1D = pltpu.CompilerParams(dimension_semantics=("parallel",))


# ----------------------------------------------------------------------------
# Kernel 1: fused linear  (matmul + bias [+ relu] [+ residual] [+ layernorm])
# ----------------------------------------------------------------------------
def _fused_linear_kernel(*refs, activation, has_residual, has_ln, eps):
    x_ref, w_ref, b_ref = refs[0], refs[1], refs[2]
    idx = 3
    res_ref = None
    if has_residual:
        res_ref = refs[idx]
        idx += 1
    g_ref = beta_ref = None
    if has_ln:
        g_ref, beta_ref = refs[idx], refs[idx + 1]
        idx += 2
    o_ref = refs[idx]

    acc = jnp.dot(
        x_ref[...].astype(jnp.bfloat16),
        w_ref[...].astype(jnp.bfloat16),
        preferred_element_type=jnp.float32,
    )
    acc = acc + b_ref[...]
    if activation == "relu":
        acc = jnp.maximum(acc, 0.0)
    if has_residual:
        acc = acc + res_ref[...]
    if has_ln:
        mu = jnp.mean(acc, axis=-1, keepdims=True)
        var = jnp.mean(jnp.square(acc - mu), axis=-1, keepdims=True)
        acc = (acc - mu) * jax.lax.rsqrt(var + eps) * g_ref[...] + beta_ref[...]
    o_ref[...] = acc.astype(o_ref.dtype)


def fused_linear(x, w, b, *, activation=None, residual=None, ln=None, eps=1e-5):
    """x: (M, K), w: (K, N), b: (1, N) -> (M, N); optional relu / residual / LayerNorm."""
    M, K = x.shape
    N = w.shape[1]
    tm = _row_tile(M)
    in_specs = [
        pl.BlockSpec((tm, K), lambda i: (i, 0)),
        pl.BlockSpec((K, N), lambda i: (0, 0)),
        pl.BlockSpec((1, N), lambda i: (0, 0)),
    ]
    args = [x, w, b]
    if residual is not None:
        in_specs.append(pl.BlockSpec((tm, N), lambda i: (i, 0)))
        args.append(residual)
    if ln is not None:
        in_specs.append(pl.BlockSpec((1, N), lambda i: (0, 0)))
        in_specs.append(pl.BlockSpec((1, N), lambda i: (0, 0)))
        args.extend([ln[0], ln[1]])
    kernel = functools.partial(
        _fused_linear_kernel,
        activation=activation,
        has_residual=residual is not None,
        has_ln=ln is not None,
        eps=eps,
    )
    return pl.pallas_call(
        kernel,
        grid=(M // tm,),
        in_specs=in_specs,
        out_specs=pl.BlockSpec((tm, N), lambda i: (i, 0)),
        out_shape=jax.ShapeDtypeStruct((M, N), jnp.float32),
        compiler_params=_PARALLEL_1D,
    )(*args)


# ----------------------------------------------------------------------------
# Kernel 2: fused feed-forward  (linear+relu -> linear + residual + layernorm)
# ----------------------------------------------------------------------------
def _ffn_kernel(x_ref, w1_ref, b1_ref, w2_ref, b2_ref, g_ref, beta_ref, o_ref, *, eps):
    x = x_ref[...]
    h = jnp.dot(
        x.astype(jnp.bfloat16), w1_ref[...].astype(jnp.bfloat16),
        preferred_element_type=jnp.float32,
    ) + b1_ref[...]
    h = jnp.maximum(h, 0.0)
    y = jnp.dot(
        h.astype(jnp.bfloat16), w2_ref[...].astype(jnp.bfloat16),
        preferred_element_type=jnp.float32,
    ) + b2_ref[...]
    y = y + x  # residual
    mu = jnp.mean(y, axis=-1, keepdims=True)
    var = jnp.mean(jnp.square(y - mu), axis=-1, keepdims=True)
    y = (y - mu) * jax.lax.rsqrt(var + eps) * g_ref[...] + beta_ref[...]
    o_ref[...] = y.astype(o_ref.dtype)


def fused_ffn(x, w1, b1, w2, b2, *, ln, eps=1e-5):
    M, D = x.shape
    dff = w1.shape[1]
    tm = _row_tile(M)
    return pl.pallas_call(
        functools.partial(_ffn_kernel, eps=eps),
        grid=(M // tm,),
        in_specs=[
            pl.BlockSpec((tm, D), lambda i: (i, 0)),
            pl.BlockSpec((D, dff), lambda i: (0, 0)),
            pl.BlockSpec((1, dff), lambda i: (0, 0)),
            pl.BlockSpec((dff, D), lambda i: (0, 0)),
            pl.BlockSpec((1, D), lambda i: (0, 0)),
            pl.BlockSpec((1, D), lambda i: (0, 0)),
            pl.BlockSpec((1, D), lambda i: (0, 0)),
        ],
        out_specs=pl.BlockSpec((tm, D), lambda i: (i, 0)),
        out_shape=jax.ShapeDtypeStruct((M, D), jnp.float32),
        compiler_params=_PARALLEL_1D,
    )(x, w1, b1, w2, b2, ln[0], ln[1])


# ----------------------------------------------------------------------------
# Kernel 3: multi-head attention — all heads of one batch element per grid step,
# mask passed once per batch (NOT replicated across heads), lane-dense output.
# ----------------------------------------------------------------------------
def _attn_kernel(q_ref, k_ref, v_ref, m_ref, o_ref, *, nhead, head_dim, scale):
    q = q_ref[0].astype(jnp.bfloat16)  # (Sq, H*Dh)
    k = k_ref[0].astype(jnp.bfloat16)  # (Sk, H*Dh)
    v = v_ref[0].astype(jnp.bfloat16)  # (Sk, H*Dh)
    m = m_ref[0]                       # (Sq, Sk) additive, f32
    outs = []
    for h in range(nhead):  # static small loop: 2-D MXU dots per head
        lo = h * head_dim
        qh = q[:, lo:lo + head_dim]
        kh = k[:, lo:lo + head_dim]
        vh = v[:, lo:lo + head_dim]
        s = jax.lax.dot_general(
            qh, kh, (((1,), (1,)), ((), ())), preferred_element_type=jnp.float32
        )
        s = s * scale + m
        s = s - jnp.max(s, axis=-1, keepdims=True)
        p = jnp.exp(s)
        p = p * pl.reciprocal(jnp.sum(p, axis=-1, keepdims=True), approx=True)
        outs.append(
            jnp.dot(p.astype(jnp.bfloat16), vh, preferred_element_type=jnp.float32)
        )
    o_ref[0] = jnp.concatenate(outs, axis=-1).astype(o_ref.dtype)


def fused_attention(q, k, v, mask, nhead, head_dim, scale):
    """q: (B, Sq, H*Dh), k/v: (B, Sk, H*Dh), mask: (B, Sq, Sk) additive -> (B, Sq, H*Dh)."""
    B, Sq, P = q.shape
    Sk = k.shape[1]
    kernel = functools.partial(_attn_kernel, nhead=nhead, head_dim=head_dim, scale=scale)
    return pl.pallas_call(
        kernel,
        grid=(B,),
        in_specs=[
            pl.BlockSpec((1, Sq, P), lambda b: (b, 0, 0)),
            pl.BlockSpec((1, Sk, P), lambda b: (b, 0, 0)),
            pl.BlockSpec((1, Sk, P), lambda b: (b, 0, 0)),
            pl.BlockSpec((1, Sq, Sk), lambda b: (b, 0, 0)),
        ],
        out_specs=pl.BlockSpec((1, Sq, P), lambda b: (b, 0, 0)),
        out_shape=jax.ShapeDtypeStruct((B, Sq, P), jnp.float32),
        compiler_params=_PARALLEL_1D,
    )(q, k, v, mask)


# ----------------------------------------------------------------------------
# Kernel 4: fused head  (fc matmul + bias + log_softmax)
# ----------------------------------------------------------------------------
def _head_kernel(x_ref, w_ref, b_ref, o_ref):
    logits = jnp.dot(
        x_ref[...].astype(jnp.bfloat16), w_ref[...].astype(jnp.bfloat16),
        preferred_element_type=jnp.float32,
    ) + b_ref[...]
    mx = jnp.max(logits, axis=-1, keepdims=True)
    s = logits - mx
    o_ref[...] = (s - jnp.log(jnp.sum(jnp.exp(s), axis=-1, keepdims=True))).astype(
        o_ref.dtype
    )


def fused_head(x, w, b):
    M, D = x.shape
    N = w.shape[1]
    tm = _row_tile(M)
    return pl.pallas_call(
        _head_kernel,
        grid=(M // tm,),
        in_specs=[
            pl.BlockSpec((tm, D), lambda i: (i, 0)),
            pl.BlockSpec((D, N), lambda i: (0, 0)),
            pl.BlockSpec((1, N), lambda i: (0, 0)),
        ],
        out_specs=pl.BlockSpec((tm, N), lambda i: (i, 0)),
        out_shape=jax.ShapeDtypeStruct((M, N), jnp.float32),
        compiler_params=_PARALLEL_1D,
    )(x, w, b)


# ----------------------------------------------------------------------------
# Model glue (masks, embedding, layer composition) in plain JAX — batch-first layout
# ----------------------------------------------------------------------------
def transformer_forward(params, src, trg, seq_len, trg_len):
    B, F_in, T_src = src.shape
    T_trg = trg.shape[1]
    D = params["d_model"]
    H = params["nhead"]
    Dh = params["head_dim"]
    P = H * Dh
    scale = 1.0 / math.sqrt(Dh)

    # ---- cnn_encoder: per-frame projection (1x1 conv) + ReLU ----------------
    x = src.transpose(0, 2, 1).reshape(B * T_src, F_in)            # (B*T_src, F_in)
    x = fused_linear(x, params["cnn_w"], params["cnn_b"], activation="relu")
    seq_len_cnn = seq_len  # TODO(synk): 1x1 conv preserves the temporal length

    # ---- positional encodings (dropout is identity at eval) ----------------
    x = (x.reshape(B, T_src, D) + params["pe"][None, :T_src]).reshape(B * T_src, D)

    # ---- masks (per batch only; heads share the same additive mask) --------
    src_kpm = jnp.arange(T_src)[None, :] >= seq_len_cnn[:, None]           # (B, T_src)
    enc_mask = jnp.broadcast_to(
        jnp.where(src_kpm[:, None, :], NEG_INF, 0.0), (B, T_src, T_src)
    ).astype(jnp.float32)
    trg_kpm = (trg == 5) | (trg == 4)                                       # (B, T_trg)
    nopeak = jnp.where(
        jnp.triu(jnp.ones((T_trg, T_trg), jnp.float32), 1) == 1, NEG_INF, 0.0
    )
    self_mask = (
        jnp.where(trg_kpm[:, None, :], NEG_INF, 0.0) + nopeak[None, :, :]
    ).astype(jnp.float32)
    self_mask = jnp.broadcast_to(self_mask, (B, T_trg, T_trg))
    cross_mask = jnp.broadcast_to(
        jnp.where(src_kpm[:, None, :], NEG_INF, 0.0), (B, T_trg, T_src)
    ).astype(jnp.float32)

    # ---- target embedding (padding_idx=5 -> zero row) + positional enc -----
    y = params["embed"][trg] + params["pe"][None, :T_trg]                   # (B, T_trg, D)
    y = y.reshape(B * T_trg, D)

    # ---- encoder -------------------------------------------------------------
    for lp in params["enc_layers"]:
        ap = lp["attn"]
        qkv = fused_linear(x, ap["wqkv"], ap["bqkv"]).reshape(B, T_src, 3 * P)
        a = fused_attention(
            qkv[..., :P], qkv[..., P:2 * P], qkv[..., 2 * P:], enc_mask, H, Dh, scale
        )
        x = fused_linear(
            a.reshape(B * T_src, P), ap["wo"], ap["bo"], residual=x, ln=lp["ln1"]
        )
        x = fused_ffn(x, lp["ff_w1"], lp["ff_b1"], lp["ff_w2"], lp["ff_b2"], ln=lp["ln2"])
    e_flat = x                                   # (B*T_src, D)

    # ---- decoder -------------------------------------------------------------
    for lp in params["dec_layers"]:
        sp = lp["self_attn"]
        qkv = fused_linear(y, sp["wqkv"], sp["bqkv"]).reshape(B, T_trg, 3 * P)
        a = fused_attention(
            qkv[..., :P], qkv[..., P:2 * P], qkv[..., 2 * P:], self_mask, H, Dh, scale
        )
        y = fused_linear(
            a.reshape(B * T_trg, P), sp["wo"], sp["bo"], residual=y, ln=lp["ln1"]
        )
        cp = lp["cross_attn"]
        q = fused_linear(y, cp["wq"], cp["bq"]).reshape(B, T_trg, P)
        kv = fused_linear(e_flat, cp["wkv"], cp["bkv"]).reshape(B, T_src, 2 * P)
        a = fused_attention(q, kv[..., :P], kv[..., P:], cross_mask, H, Dh, scale)
        y = fused_linear(
            a.reshape(B * T_trg, P), cp["wo"], cp["bo"], residual=y, ln=lp["ln2"]
        )
        y = fused_ffn(y, lp["ff_w1"], lp["ff_b1"], lp["ff_w2"], lp["ff_b2"], ln=lp["ln3"])

    # ---- head: fc + log_softmax fused ---------------------------------------
    logp = fused_head(y, params["fc_w"], params["fc_b"])
    output = logp.reshape(B, T_trg, params["ntoken"])
    fig, fig2 = None, None  # matched to the PyTorch module (always None here)
    return output, fig, fig2


# ----------------------------------------------------------------------------
# Deterministic parameter construction (QKV / KV weights pre-concatenated)
# ----------------------------------------------------------------------------
def _init_linear(key, fan_in, fan_out):
    kw, kb = jax.random.split(key)
    bound = 1.0 / math.sqrt(fan_in)
    w = jax.random.uniform(kw, (fan_in, fan_out), jnp.float32, -bound, bound)
    b = jax.random.uniform(kb, (1, fan_out), jnp.float32, -bound, bound)
    return w, b


def make_params(key, d_model, nhead, nhid, dff, nlayers, ntoken, f_in, max_len):
    head_dim = nhid          # Hopfield hidden_size = per-head association dim
    proj = nhead * head_dim
    keys = iter(jax.random.split(key, 256))

    def lin(fi, fo):
        return _init_linear(next(keys), fi, fo)

    def attn_self():
        wq, bq = lin(d_model, proj)
        wk, bk = lin(d_model, proj)
        wv, bv = lin(d_model, proj)
        wo, bo = lin(proj, d_model)
        return dict(
            wqkv=jnp.concatenate([wq, wk, wv], axis=1),
            bqkv=jnp.concatenate([bq, bk, bv], axis=1),
            wo=wo, bo=bo,
        )

    def attn_cross():
        wq, bq = lin(d_model, proj)
        wk, bk = lin(d_model, proj)
        wv, bv = lin(d_model, proj)
        wo, bo = lin(proj, d_model)
        return dict(
            wq=wq, bq=bq,
            wkv=jnp.concatenate([wk, wv], axis=1),
            bkv=jnp.concatenate([bk, bv], axis=1),
            wo=wo, bo=bo,
        )

    def ln_p():
        return (jnp.ones((1, d_model), jnp.float32), jnp.zeros((1, d_model), jnp.float32))

    enc_layers, dec_layers = [], []
    for _ in range(nlayers):
        w1, b1 = lin(d_model, dff)
        w2, b2 = lin(dff, d_model)
        enc_layers.append(dict(attn=attn_self(), ln1=ln_p(), ln2=ln_p(),
                               ff_w1=w1, ff_b1=b1, ff_w2=w2, ff_b2=b2))
    for _ in range(nlayers):
        w1, b1 = lin(d_model, dff)
        w2, b2 = lin(dff, d_model)
        dec_layers.append(dict(self_attn=attn_self(), cross_attn=attn_cross(),
                               ln1=ln_p(), ln2=ln_p(), ln3=ln_p(),
                               ff_w1=w1, ff_b1=b1, ff_w2=w2, ff_b2=b2))

    cnn_w, cnn_b = lin(f_in, d_model)
    fc_w, fc_b = lin(d_model, ntoken)

    embed = jax.random.normal(next(keys), (7, d_model), jnp.float32)
    embed = embed.at[5].set(0.0)  # padding_idx=5

    pos = jnp.arange(max_len, dtype=jnp.float32)[:, None]
    div = jnp.exp(
        jnp.arange(0, d_model, 2, dtype=jnp.float32) * (-math.log(10000.0) / d_model)
    )
    pe = jnp.zeros((max_len, d_model), jnp.float32)
    pe = pe.at[:, 0::2].set(jnp.sin(pos * div))
    pe = pe.at[:, 1::2].set(jnp.cos(pos * div))

    return dict(d_model=d_model, nhead=nhead, head_dim=head_dim, ntoken=ntoken,
                enc_layers=enc_layers, dec_layers=dec_layers,
                cnn_w=cnn_w, cnn_b=cnn_b, fc_w=fc_w, fc_b=fc_b,
                embed=embed, pe=pe)


if __name__ == "__main__":
    key = jax.random.PRNGKey(0)
    B, F_in, T_src, T_trg = 2, 8, 16, 8
    d_model, nhead, nhid, dff, nlayers, ntoken = 32, 4, 8, 64, 2, 7

    kp, kx = jax.random.split(key)
    params = make_params(kp, d_model, nhead, nhid, dff, nlayers, ntoken, F_in, 250)

    src = jax.random.normal(kx, (B, F_in, T_src), jnp.float32)  # layout: NCW
    trg = jnp.array([[1, 2, 3, 4, 5, 5, 0, 6],
                     [2, 1, 0, 3, 4, 5, 5, 5]], dtype=jnp.int32)
    seq_len = jnp.array([16, 12], dtype=jnp.int32)
    trg_len = jnp.array([8, 6], dtype=jnp.int32)

    output, fig, fig2 = transformer_forward(params, src, trg, seq_len, trg_len)
    jax.block_until_ready(output)
    assert output.shape == (B, T_trg, ntoken)
    assert bool(jnp.all(jnp.isfinite(output)))
    print("KERNEL_OK")
</pallas_src>

<mosaic_0001>
module attributes {stable_mosaic.version = 11 : i64} {
  func.func @_fused_linear_kernel(%arg0: i32, %arg1: memref<32x8xf32, #tpu.memory_space<vmem>>, %arg2: memref<8x32xf32, #tpu.memory_space<vmem>>, %arg3: memref<1x32xf32, #tpu.memory_space<vmem>>, %arg4: memref<32x32xf32, #tpu.memory_space<vmem>>) attributes {dimension_semantics = [#tpu.dimension_semantics<parallel>], iteration_bounds = array<i64: 1>, scalar_prefetch = 0 : i64, scratch_operands = 0 : i64, tpu.core_type = #tpu.core_type<tc>, window_params = [{transform_indices = @transform_0, window_bounds = array<i64: 32, 8>}, {pipeline_mode = #tpu.pipeline_mode<synchronous>, transform_indices = @transform_1, window_bounds = array<i64: 8, 32>}, {pipeline_mode = #tpu.pipeline_mode<synchronous>, transform_indices = @transform_2, window_bounds = array<i64: 1, 32>}, {transform_indices = @transform_3, window_bounds = array<i64: 32, 32>}]} {
    %c0 = arith.constant 0 : index
    %c0_0 = arith.constant 0 : index
    %0 = vector.load %arg1[%c0, %c0_0] : memref<32x8xf32, #tpu.memory_space<vmem>>, vector<32x8xf32>
    %1 = arith.truncf %0 : vector<32x8xf32> to vector<32x8xbf16>
    %c0_1 = arith.constant 0 : index
    %c0_2 = arith.constant 0 : index
    %2 = vector.load %arg2[%c0_1, %c0_2] : memref<8x32xf32, #tpu.memory_space<vmem>>, vector<8x32xf32>
    %3 = arith.truncf %2 : vector<8x32xf32> to vector<8x32xbf16>
    %cst = arith.constant dense<0.000000e+00> : vector<32x32xf32>
    %4 = tpu.matmul %1, %3, %cst {dimension_numbers = #tpu.dot_dimension_numbers<[1], [0], [0], [1], [0, 0, 1, 1], [], []>} : vector<32x8xbf16>, vector<8x32xbf16>, vector<32x32xf32> -> vector<32x32xf32>
    %c0_3 = arith.constant 0 : index
    %c0_4 = arith.constant 0 : index
    %5 = vector.load %arg3[%c0_3, %c0_4] : memref<1x32xf32, #tpu.memory_space<vmem>>, vector<1x32xf32>
    %6 = vector.broadcast %5 : vector<1x32xf32> to vector<32x32xf32>
    %7 = arith.addf %4, %6 : vector<32x32xf32>
    %cst_5 = arith.constant 0.000000e+00 : f32
    %8 = vector.broadcast %cst_5 : f32 to vector<32x32xf32>
    %9 = arith.maximumf %7, %8 : vector<32x32xf32>
    %c0_6 = arith.constant 0 : index
    %c0_7 = arith.constant 0 : index
    %10 = vector.load %arg4[%c0_6, %c0_7] : memref<32x32xf32, #tpu.memory_space<vmem>>, vector<32x32xf32>
    tpu.vector_store %arg4[%c0_6, %c0_7], %9 {strides = array<i32>} : memref<32x32xf32, #tpu.memory_space<vmem>>, vector<32x32xf32>,
    return
  }
  func.func @transform_0(%arg0: i32) -> (i32, i32) {
    %c0_i32 = arith.constant 0 : i32
    %c0_i32_0 = arith.constant 0 : i32
    return %arg0, %c0_i32 : i32, i32
  }
  func.func @transform_1(%arg0: i32) -> (i32, i32) {
    %c0_i32 = arith.constant 0 : i32
    %c0_i32_0 = arith.constant 0 : i32
    %c0_i32_1 = arith.constant 0 : i32
    return %c0_i32, %c0_i32_0 : i32, i32
  }
  func.func @transform_2(%arg0: i32) -> (i32, i32) {
    %c0_i32 = arith.constant 0 : i32
    %c0_i32_0 = arith.constant 0 : i32
    %c0_i32_1 = arith.constant 0 : i32
    return %c0_i32, %c0_i32_0 : i32, i32
  }
  func.func @transform_3(%arg0: i32) -> (i32, i32) {
    %c0_i32 = arith.constant 0 : i32
    %c0_i32_0 = arith.constant 0 : i32
    return %arg0, %c0_i32 : i32, i32
  }
}

</mosaic_0001>

<bundles_post_ra>
// kernel: tpu_custom_call.1
= control target key start
LH: loop header
LB: loop body
LE: loop exit
PB: predicated region body
PF: predicated region fallthrough
CT: control target
= control target key end

     0   :  { %vm38_vm0 = vcmask 1043456   ;;  %vm31_vm1 = vcmask 64512   ;;  %s213_s0 = inlined_call_operand.vmem [shape: f32[32,8], index: 0, kind: input, shape index: {}]   ;;  %s214_s1 = inlined_call_operand.vmem [shape: f32[8,32], index: 1, kind: input, shape index: {}]   ;;  %s215_s2 = inlined_call_operand.vmem [shape: f32[1,32], index: 2, kind: input, shape index: {}]   ;;  %s216_s3 = inlined_call_operand.hbm [shape: f32[32,32], index: 3, kind: output, shape index: {}]  }
   0x1   :  { %v22_v0 = vld [vmem:[%s214_s1] sm:$0xff]  ;;  %v17_v2 = vld [vmem:[%s213_s0 + $0x8] sm:$0xff]  ;;  %v18_v5 = vld [vmem:[%s213_s0 + $0x10] sm:$0xff] }
   0x2   :  { %v16_v1 = vld [vmem:[%s213_s0] sm:$0xff]  ;;  %v23_v3 = vpack.c.bf16 %v22_v0, %v22_v0  ;;  %v19_v6 = vld [vmem:[%s213_s0 + $0x18] sm:$0xff] }
   0x3   :  { %v20_v4 = vpack.c.bf16 %v17_v2, %v16_v1 }
   0x4   :  { %8 = vsyncpa [#allocation3], 0  ;;  %128 = vmatprep.subr.msk.bf16.mxu0 %vm38_vm0, %v23_v3  ;;  %v40_v7 = vsel %vm38_vm0, %v23_v3, 0  ;;  %v21_v8 = vpack.c.bf16 %v19_v6, %v18_v5  ;;  %v116_v9 = vld [vmem:[%s215_s2] ss:$0 sm:$0xff]  ;;  %vm95_vm2 = vcmask 261120  }
   0x5   :  { %124 = vmatprep.mubr.msk.bf16.mxu0 %vm31_vm1, %v20_v4  ;;  %123 = vmatpush3.bf16.msra.mxu0 %v40_v7  ;;  %s156_s23 = smov [#allocation2]  }
   0x6   :  { %s105_s24 = sshll.u32 %s156_s23, 4  ;;  %s106_s24 = int_to_ptr.vmem [resolvable:$true] %s105_s24 }
   0x7   :  { %s132_s0 = scalar_lea.vmem %s106_s24, 512  ;;  %p137_p1 = scmp.lt.s32.totalorder %s106_s24, %s106_s24 }
   0x8   :  { %125 = vmatmul.mubr.msk.bf16.vlgmr.msra.gmra.mrb[0].mxu0 %vm31_vm1, %v21_v8  ;;  %p133_p0 = scmp.ne.s32.totalorder %s106_s24, %s132_s0  ;;  %p138_p2 = scmp.lt.s32.totalorder %s132_s0, %s132_s0 }
   0xa   :  { %p139_p3 = por %p138_p2, %p137_p1 }
   0xc   :  { %p140_p4 = pnand %p139_p3, %p133_p0 }
  0xdb   :  { %v126_v10 = vpop.f32.mrb[0].mxu0 }
  0xdc   :  { %v85_v11 = vadd.f32 %v126_v10, %v116_v9  ;;  %v76_v12 = vpop.f32.mrb[1].mxu0 }
  0xdd   :  { %v77_v13 = vadd.f32 %v116_v9, %v76_v12  ;;  %v127_v14 = vpop.f32.mrb[2].mxu0 }
  0xde   :  { %v93_v15 = vmax.f32 %v85_v11, 0.0  ;;  %v88_v16 = vadd.f32 %v127_v14, %v116_v9  ;;  %v79_v17 = vpop.f32.mrb[3].mxu0 }
  0xdf   :  { %v91_v18 = vmax.f32 %v77_v13, 0.0  ;;  %v80_v19 = vadd.f32 %v116_v9, %v79_v17 }
  0xe0   :  { %98 = vst.msk [vmem:[#allocation2 + $0x10] sm:$0xff] %vm95_vm2, %v93_v15  ;;  %v94_v20 = vmax.f32 %v88_v16, 0.0 }
  0xe1   :  { %96 = vst.msk [vmem:[#allocation2] sm:$0xff] %vm95_vm2, %v91_v18  ;;  %v92_v21 = vmax.f32 %v80_v19, 0.0 }
  0xe2   :  { %99 = vst.msk [vmem:[#allocation2 + $0x18] sm:$0xff] %vm95_vm2, %v94_v20 }
  0xe3   :  { %97 = vst.msk [vmem:[#allocation2 + $0x8] sm:$0xff] %vm95_vm2, %v92_v21 }
  0xe4   :  { %143 = shalt.err (!%p140_p4)
}
  0xe5   :  { %s144_s26 = scalar_lea.hbm %s216_s3, 512 }
  0xe6   :  { %p145_p5 = scmp.ne.s32.totalorder %s216_s3, %s144_s26  ;;  %p148_p6 = scmp.lt.u32.totalorder %s144_s26, %s216_s3 }
  0xe8   :  { %p150_p7 = pnand %p148_p6, %p145_p5 }
  0xea   :  { %153 = shalt.err (!%p150_p7)
}
  0xeb   :  { %s157_s4 = smov 128   ;;  %s158_s5 = smov 8  }
  0xec   :  { %111 = dma.vmem_to_hbm [thread:$0]  %s106_s24, 512, %s216_s3, [#allocation3], %s157_s4, %s157_s4, %s158_s5  }
  0xed   :  { %154 = dma.done.wait [#allocation3], 512  }
  0xee   :  { %155 = vsyncadd [#allocation3], 4294966784 }
  0xef   :  { %115 = vsyncpa [#allocation3], 1 }

</bundles_post_ra>
